<compile_context>
chip_gen: v6e
topology: v6e:2x2x1
jax: 0.10.0
libtpu: 0.0.40
codegen_flags: <defaults>
</compile_context>

<pallas_src>
import functools

import jax
import jax.numpy as jnp
from jax.experimental import pallas as pl
from jax.experimental.pallas import tpu as pltpu

_LANE = 128            # lane tile (last dim)
_BLOCK_ROWS = 8192     # rows per block: 4 MiB f32 per input per block
_NUM_ACC = 5           # [pos_loss_sum, total_loss_sum, label_sum, tp, pred_sum]
_SENTINEL = -1e4       # logits pad value => exactly zero contribution everywhere
_VMEM_LIMIT_BYTES = 48 * 1024 * 1024


def _wbce_partials_kernel(logits_ref, labels_ref, out_ref, acc_ref, *,
                          block_rows, valid_rows, apply_mask, num_cores):
    """Accumulates 5 partial sums into a VMEM (5, 8, 128) vector accumulator.

    out_ref (SMEM, f32[5] per core), written once on the core's last step:
      [0] sum of BCE losses where label >= 0.5
      [1] sum of BCE losses over all elements
      [2] sum of labels
      [3] sum over predicted-positive elements of label (true positives)
      [4] count of predicted-positive elements
    """
    if num_cores == 1:
        c = 0
        j = pl.program_id(0)
        n_inner = pl.num_programs(0)
    else:
        c = pl.program_id(0)          # TensorCore split (CORE_PARALLEL)
        j = pl.program_id(1)          # reduction steps for this core
        n_inner = pl.num_programs(1)

    @pl.when(j == 0)
    def _init():
        acc_ref[...] = jnp.zeros_like(acc_ref)

    x = logits_ref[...].astype(jnp.float32)
    y = labels_ref[...].astype(jnp.float32)

    if apply_mask:
        # Rows past the end of the real data (ragged last block, or a clamped
        # duplicate block on the 2-core split) hold garbage; replace them with
        # the zero-contribution sentinel.  Full-width iota keeps this
        # lane-dense (one VPU compare + two selects per vreg).
        start = (c * n_inner + j) * block_rows
        row = jax.lax.broadcasted_iota(jnp.int32, (block_rows, _LANE), 0) + start
        valid = row < valid_rows
        x = jnp.where(valid, x, _SENTINEL)
        y = jnp.where(valid, y, 0.0)

    # binary_cross_entropy_with_logits, reduction='none':
    #   max(x, 0) - x*y + log(1 + exp(-|x|))
    losses = jnp.maximum(x, 0.0) - x * y + jnp.log1p(jnp.exp(-jnp.abs(x)))
    pred_f = (x > 0.0).astype(jnp.float32)    # sigmoid(x) > 0.5  <=>  x > 0
    pos_f = (y >= 0.5).astype(jnp.float32)

    n8 = block_rows // 8               # wrapper guarantees block_rows % 8 == 0

    def fold(v):
        # (block_rows, 128) -> (8, 128): tile-aligned reshape + leading-axis
        # sum = pure vreg-wise VPU adds, no XLU.
        return jnp.sum(v.reshape(n8, 8, _LANE), axis=0)

    acc_ref[0] += fold(pos_f * losses)
    acc_ref[1] += fold(losses)
    acc_ref[2] += fold(y)
    acc_ref[3] += fold(pred_f * y)
    acc_ref[4] += fold(pred_f)

    @pl.when(j == n_inner - 1)
    def _emit():
        # The only full (8,128)->scalar reductions: once per core, not per step.
        for k in range(_NUM_ACC):
            out_ref[k] = jnp.sum(acc_ref[k])


@functools.partial(
    jax.jit,
    static_argnames=("return_precision_and_recall", "num_cores", "block_rows"))
def weighted_bce_loss(logits, labels, return_precision_and_recall=False, *,
                      num_cores=1, block_rows=None):
    assert logits.shape == labels.shape
    batch = labels.shape[0]              # labels.shape[0] in the torch reference
    n_elems = logits.size
    num_cores = max(1, int(num_cores))

    flat_logits = jnp.reshape(logits, (-1,))
    flat_labels = jnp.reshape(labels, (-1,))

    rows_needed = -(-n_elems // _LANE)
    req = _BLOCK_ROWS if block_rows is None else max(8, int(block_rows))

    if req >= rows_needed:
        # Single block spanning the whole input: round rows up to a sublane
        # multiple so the in-kernel fold stays a tile-aligned reshape.
        rows = -(-rows_needed // 8) * 8
        br = rows
    else:
        rows = rows_needed
        br = (req // 8) * 8              # BlockSpec sublane constraint

    # Only small single-block inputs (or element counts not a multiple of 128)
    # need wrapper-side padding; everything else streams straight from the
    # caller's buffers with zero extra HBM traffic.  The pad is a sentinel
    # whose contribution to every accumulator is exactly zero.
    pad = rows * _LANE - n_elems
    if pad:
        flat_logits = jnp.pad(flat_logits, (0, pad), constant_values=_SENTINEL)
        flat_labels = jnp.pad(flat_labels, (0, pad), constant_values=0)

    logits2 = flat_logits.reshape(rows, _LANE)
    labels2 = flat_labels.reshape(rows, _LANE)

    nb = -(-rows // br)                  # total row-blocks
    inner = -(-nb // num_cores)          # blocks per core
    # In-kernel row masking is only compiled in when the rectangular
    # (num_cores x inner x br) coverage exceeds the real row count.
    apply_mask = (num_cores * inner * br) != rows

    kernel = functools.partial(
        _wbce_partials_kernel, block_rows=br, valid_rows=rows,
        apply_mask=apply_mask, num_cores=num_cores)

    if num_cores == 1:
        grid = (inner,)
        data_map = lambda j: (j, 0)
        out_map = lambda j: (0,)
        dims = ("arbitrary",)
    else:
        grid = (num_cores, inner)
        # Clamp so the DMA never walks past the array; clamped duplicate
        # blocks are fully masked out inside the kernel.
        data_map = lambda c, j: (jnp.minimum(c * inner + j, nb - 1), 0)
        out_map = lambda c, j: (c,)
        # CORE_PARALLEL actually shards the leading axis across TensorCores
        # (v7x); plain "parallel" does not change codegen for this pattern.
        dims = (pltpu.CORE_PARALLEL, pltpu.ARBITRARY)

    partials = pl.pallas_call(
        kernel,
        out_shape=jax.ShapeDtypeStruct((num_cores * _NUM_ACC,), jnp.float32),
        grid_spec=pltpu.PrefetchScalarGridSpec(
            num_scalar_prefetch=0,
            grid=grid,
            in_specs=[
                pl.BlockSpec((br, _LANE), data_map),
                pl.BlockSpec((br, _LANE), data_map),
            ],
            out_specs=pl.BlockSpec((_NUM_ACC,), out_map,
                                   memory_space=pltpu.SMEM),
            scratch_shapes=[pltpu.VMEM((_NUM_ACC, 8, _LANE), jnp.float32)],
        ),
        compiler_params=pltpu.CompilerParams(
            dimension_semantics=dims,
            vmem_limit_bytes=_VMEM_LIMIT_BYTES),
    )(logits2, labels2)

    sums = partials.reshape(num_cores, _NUM_ACC).sum(axis=0)
    pos_loss, tot_loss, label_sum, tp, pred_sum = (
        sums[0], sums[1], sums[2], sums[3], sums[4])

    # Faithful to vision3d: negative_w = labels.sum() / labels.shape[0]; it can
    # exceed 1.0 when there are many positives per batch row (by design).
    negative_w = label_sum / batch
    positive_w = 1.0 - negative_w
    neg_loss = tot_loss - pos_loss
    loss = (positive_w * pos_loss + negative_w * neg_loss) / n_elems

    if return_precision_and_recall:
        precision = tp / (pred_sum + 1e-12)
        recall = tp / (label_sum + 1e-12)
        return loss, precision, recall
    return loss


class WeightedBCELoss:
    """JAX/Pallas equivalent of vision3d's WeightedBCELoss (no parameters)."""

    def __init__(self, return_precision_and_recall=False, num_cores=1):
        self.return_precision_and_recall = return_precision_and_recall
        self.num_cores = num_cores       # set to 2 on 2-TensorCore chips (v7x)

    def __call__(self, logits, labels):
        return weighted_bce_loss(
            logits, labels,
            return_precision_and_recall=self.return_precision_and_recall,
            num_cores=self.num_cores)


def _reference(logits, labels):
    """Pure-JAX reference mirroring the torch code, for a sanity check."""
    x = logits.astype(jnp.float32)
    y = labels.astype(jnp.float32)
    nw = y.sum() / y.shape[0]
    pw = 1.0 - nw
    weights = jnp.where(y >= 0.5, pw, nw)
    losses = jnp.maximum(x, 0.0) - x * y + jnp.log1p(jnp.exp(-jnp.abs(x)))
    loss = jnp.mean(weights * losses)
    probs = jax.nn.sigmoid(x)
    preds = (probs > 0.5).astype(jnp.float32)
    tp = (preds * y).sum()
    precision = tp / (preds.sum() + 1e-12)
    recall = tp / (y.sum() + 1e-12)
    return loss, precision, recall


def _check(logits, labels, **kwargs):
    loss, precision, recall = weighted_bce_loss(
        logits, labels, return_precision_and_recall=True, **kwargs)
    jax.block_until_ready((loss, precision, recall))
    ref_loss, ref_p, ref_r = _reference(logits.astype(jnp.float32),
                                        labels.astype(jnp.float32))
    assert jnp.allclose(loss, ref_loss, rtol=1e-4, atol=1e-4), (loss, ref_loss)
    assert jnp.allclose(precision, ref_p, rtol=1e-5, atol=1e-6), (precision, ref_p)
    assert jnp.allclose(recall, ref_r, rtol=1e-5, atol=1e-6), (recall, ref_r)


if __name__ == "__main__":
    key = jax.random.PRNGKey(0)
    keys = jax.random.split(key, 6)

    # Case 1: small NCHW dense-prediction head (f32) — single full block.
    logits1 = jax.random.normal(keys[0], (2, 4, 16, 16), dtype=jnp.float32)
    labels1 = (jax.random.uniform(keys[1], (2, 4, 16, 16)) > 0.5).astype(jnp.float32)
    _check(logits1, labels1)

    # Case 2: element count not a multiple of 128 — exercises the sentinel pad
    # (single block, rows rounded up to a sublane multiple).
    logits2 = jax.random.normal(keys[2], (2, 3, 30, 30), dtype=jnp.float32)
    labels2 = (jax.random.uniform(keys[3], (2, 3, 30, 30)) > 0.5).astype(jnp.float32)
    _check(logits2, labels2)

    # Case 3: bf16 logits streamed in native dtype (half the HBM bytes).
    shape3 = (8, 4, 128, 128)
    logits3 = jax.random.normal(keys[4], shape3, dtype=jnp.float32).astype(jnp.bfloat16)
    labels3 = (jax.random.uniform(keys[5], shape3) > 0.5).astype(jnp.float32)
    _check(logits3, labels3)

    # Case 4: same tensors, forced small block -> multi-step accumulation into
    # the VMEM vector accumulator (no masking; coverage divides evenly).
    _check(logits3, labels3, block_rows=512)

    # Case 5: forced small block with ragged coverage -> exercises the
    # in-kernel row-mask path (garbage rows past the end are zeroed out).
    _check(logits2, labels2, block_rows=16)

    # Case 6: narrow labels supplied by the caller (bf16) — kernel upcasts on
    # the VPU; no wrapper-side cast pass over HBM.
    labels6 = labels1.astype(jnp.bfloat16)
    logits6 = logits1.astype(jnp.bfloat16)
    _check(logits6, labels6)

    # Default configuration (loss only), as in the module's default __init__.
    loss_only = WeightedBCELoss()(logits1, labels1)
    jax.block_until_ready(loss_only)

    # TODO(synk): on v7x, construct WeightedBCELoss(num_cores=2) to shard the
    # reduction across both TensorCores via CORE_PARALLEL (left off by default
    # so the kernel compiles/runs unchanged on single-core v5e/v6e).
    print("KERNEL_OK")
</pallas_src>

<mosaic_0001>
module attributes {stable_mosaic.version = 11 : i64} {
  func.func @_wbce_partials_kernel(%arg0: i32, %arg1: memref<16x128xf32, #tpu.memory_space<vmem>>, %arg2: memref<16x128xf32, #tpu.memory_space<vmem>>, %arg3: memref<5xf32, #tpu.memory_space<smem>>, %arg4: memref<5x8x128xf32, #tpu.memory_space<vmem>>) attributes {dimension_semantics = [#tpu.dimension_semantics<arbitrary>], iteration_bounds = array<i64: 1>, scalar_prefetch = 0 : i64, scratch_operands = 1 : i64, tpu.core_type = #tpu.core_type<tc>, window_params = [{transform_indices = @transform_0, window_bounds = array<i64: 16, 128>}, {transform_indices = @transform_1, window_bounds = array<i64: 16, 128>}, {transform_indices = @transform_2, window_bounds = array<i64: 5>}]} {
    %c0_i32 = arith.constant 0 : i32
    %0 = arith.cmpi eq, %arg0, %c0_i32 : i32
    %1 = arith.extui %0 : i1 to i32
    %c0_i32_0 = arith.constant 0 : i32
    %2 = arith.cmpi ne, %1, %c0_i32_0 : i32
    scf.if %2 {
      %cst_40 = arith.constant 0.000000e+00 : f32
      %68 = vector.broadcast %cst_40 : f32 to vector<5x8x128xf32>
      %c0_41 = arith.constant 0 : index
      %c0_42 = arith.constant 0 : index
      %c0_43 = arith.constant 0 : index
      %69 = vector.load %arg4[%c0_41, %c0_42, %c0_43] : memref<5x8x128xf32, #tpu.memory_space<vmem>>, vector<5x8x128xf32>
      tpu.vector_store %arg4[%c0_41, %c0_42, %c0_43], %68 {strides = array<i32>} : memref<5x8x128xf32, #tpu.memory_space<vmem>>, vector<5x8x128xf32>,
    } else {
    }
    %c0 = arith.constant 0 : index
    %c0_1 = arith.constant 0 : index
    %3 = vector.load %arg1[%c0, %c0_1] : memref<16x128xf32, #tpu.memory_space<vmem>>, vector<16x128xf32>
    %c0_2 = arith.constant 0 : index
    %c0_3 = arith.constant 0 : index
    %4 = vector.load %arg2[%c0_2, %c0_3] : memref<16x128xf32, #tpu.memory_space<vmem>>, vector<16x128xf32>
    %cst = arith.constant 0.000000e+00 : f32
    %5 = vector.broadcast %cst : f32 to vector<16x128xf32>
    %6 = arith.maximumf %3, %5 : vector<16x128xf32>
    %7 = arith.mulf %3, %4 : vector<16x128xf32>
    %8 = arith.subf %6, %7 : vector<16x128xf32>
    %9 = math.absf %3 : vector<16x128xf32>
    %cst_4 = arith.constant 0.000000e+00 : f32
    %10 = vector.broadcast %cst_4 : f32 to vector<16x128xf32>
    %11 = arith.subf %10, %9 : vector<16x128xf32>
    %12 = math.exp %11 : vector<16x128xf32>
    %13 = math.log1p %12 : vector<16x128xf32>
    %14 = arith.addf %8, %13 : vector<16x128xf32>
    %cst_5 = arith.constant 0.000000e+00 : f32
    %15 = vector.broadcast %cst_5 : f32 to vector<16x128xf32>
    %16 = arith.cmpf ogt, %3, %15 : vector<16x128xf32>
    %17 = arith.extui %16 : vector<16x128xi1> to vector<16x128xi32>
    %18 = arith.sitofp %17 : vector<16x128xi32> to vector<16x128xf32>
    %cst_6 = arith.constant 5.000000e-01 : f32
    %19 = vector.broadcast %cst_6 : f32 to vector<16x128xf32>
    %20 = arith.cmpf oge, %4, %19 : vector<16x128xf32>
    %21 = arith.extui %20 : vector<16x128xi1> to vector<16x128xi32>
    %22 = arith.sitofp %21 : vector<16x128xi32> to vector<16x128xf32>
    %c0_7 = arith.constant 0 : index
    %c0_8 = arith.constant 0 : index
    %c0_9 = arith.constant 0 : index
    %23 = vector.load %arg4[%c0_7, %c0_8, %c0_9] : memref<5x8x128xf32, #tpu.memory_space<vmem>>, vector<1x8x128xf32>
    %24 = vector.shape_cast %23 : vector<1x8x128xf32> to vector<8x128xf32>
    %25 = arith.mulf %22, %14 : vector<16x128xf32>
    %26 = vector.shape_cast %25 : vector<16x128xf32> to vector<2x8x128xf32>
    %cst_10 = arith.constant dense<0.000000e+00> : vector<8x128xf32>
    %27 = vector.multi_reduction <add>, %26, %cst_10 [0] : vector<2x8x128xf32> to vector<8x128xf32>
    %28 = arith.addf %24, %27 : vector<8x128xf32>
    %c0_11 = arith.constant 0 : index
    %c0_12 = arith.constant 0 : index
    %c0_13 = arith.constant 0 : index
    %29 = vector.load %arg4[%c0_11, %c0_12, %c0_13] : memref<5x8x128xf32, #tpu.memory_space<vmem>>, vector<1x8x128xf32>
    %30 = vector.shape_cast %29 : vector<1x8x128xf32> to vector<8x128xf32>
    %31 = vector.shape_cast %28 : vector<8x128xf32> to vector<1x8x128xf32>
    tpu.vector_store %arg4[%c0_11, %c0_12, %c0_13], %31 {strides = array<i32>} : memref<5x8x128xf32, #tpu.memory_space<vmem>>, vector<1x8x128xf32>,
    %c1 = arith.constant 1 : index
    %c0_14 = arith.constant 0 : index
    %c0_15 = arith.constant 0 : index
    %32 = vector.load %arg4[%c1, %c0_14, %c0_15] : memref<5x8x128xf32, #tpu.memory_space<vmem>>, vector<1x8x128xf32>
    %33 = vector.shape_cast %32 : vector<1x8x128xf32> to vector<8x128xf32>
    %34 = vector.shape_cast %14 : vector<16x128xf32> to vector<2x8x128xf32>
    %cst_16 = arith.constant dense<0.000000e+00> : vector<8x128xf32>
    %35 = vector.multi_reduction <add>, %34, %cst_16 [0] : vector<2x8x128xf32> to vector<8x128xf32>
    %36 = arith.addf %33, %35 : vector<8x128xf32>
    %c1_17 = arith.constant 1 : index
    %c0_18 = arith.constant 0 : index
    %c0_19 = arith.constant 0 : index
    %37 = vector.load %arg4[%c1_17, %c0_18, %c0_19] : memref<5x8x128xf32, #tpu.memory_space<vmem>>, vector<1x8x128xf32>
    %38 = vector.shape_cast %37 : vector<1x8x128xf32> to vector<8x128xf32>
    %39 = vector.shape_cast %36 : vector<8x128xf32> to vector<1x8x128xf32>
    tpu.vector_store %arg4[%c1_17, %c0_18, %c0_19], %39 {strides = array<i32>} : memref<5x8x128xf32, #tpu.memory_space<vmem>>, vector<1x8x128xf32>,
    %c2 = arith.constant 2 : index
    %c0_20 = arith.constant 0 : index
    %c0_21 = arith.constant 0 : index
    %40 = vector.load %arg4[%c2, %c0_20, %c0_21] : memref<5x8x128xf32, #tpu.memory_space<vmem>>, vector<1x8x128xf32>
    %41 = vector.shape_cast %40 : vector<1x8x128xf32> to vector<8x128xf32>
    %42 = vector.shape_cast %4 : vector<16x128xf32> to vector<2x8x128xf32>
    %cst_22 = arith.constant dense<0.000000e+00> : vector<8x128xf32>
    %43 = vector.multi_reduction <add>, %42, %cst_22 [0] : vector<2x8x128xf32> to vector<8x128xf32>
    %44 = arith.addf %41, %43 : vector<8x128xf32>
    %c2_23 = arith.constant 2 : index
    %c0_24 = arith.constant 0 : index
    %c0_25 = arith.constant 0 : index
    %45 = vector.load %arg4[%c2_23, %c0_24, %c0_25] : memref<5x8x128xf32, #tpu.memory_space<vmem>>, vector<1x8x128xf32>
    %46 = vector.shape_cast %45 : vector<1x8x128xf32> to vector<8x128xf32>
    %47 = vector.shape_cast %44 : vector<8x128xf32> to vector<1x8x128xf32>
    tpu.vector_store %arg4[%c2_23, %c0_24, %c0_25], %47 {strides = array<i32>} : memref<5x8x128xf32, #tpu.memory_space<vmem>>, vector<1x8x128xf32>,
    %c3 = arith.constant 3 : index
    %c0_26 = arith.constant 0 : index
    %c0_27 = arith.constant 0 : index
    %48 = vector.load %arg4[%c3, %c0_26, %c0_27] : memref<5x8x128xf32, #tpu.memory_space<vmem>>, vector<1x8x128xf32>
    %49 = vector.shape_cast %48 : vector<1x8x128xf32> to vector<8x128xf32>
    %50 = arith.mulf %18, %4 : vector<16x128xf32>
    %51 = vector.shape_cast %50 : vector<16x128xf32> to vector<2x8x128xf32>
    %cst_28 = arith.constant dense<0.000000e+00> : vector<8x128xf32>
    %52 = vector.multi_reduction <add>, %51, %cst_28 [0] : vector<2x8x128xf32> to vector<8x128xf32>
    %53 = arith.addf %49, %52 : vector<8x128xf32>
    %c3_29 = arith.constant 3 : index
    %c0_30 = arith.constant 0 : index
    %c0_31 = arith.constant 0 : index
    %54 = vector.load %arg4[%c3_29, %c0_30, %c0_31] : memref<5x8x128xf32, #tpu.memory_space<vmem>>, vector<1x8x128xf32>
    %55 = vector.shape_cast %54 : vector<1x8x128xf32> to vector<8x128xf32>
    %56 = vector.shape_cast %53 : vector<8x128xf32> to vector<1x8x128xf32>
    tpu.vector_store %arg4[%c3_29, %c0_30, %c0_31], %56 {strides = array<i32>} : memref<5x8x128xf32, #tpu.memory_space<vmem>>, vector<1x8x128xf32>,
    %c4 = arith.constant 4 : index
    %c0_32 = arith.constant 0 : index
    %c0_33 = arith.constant 0 : index
    %57 = vector.load %arg4[%c4, %c0_32, %c0_33] : memref<5x8x128xf32, #tpu.memory_space<vmem>>, vector<1x8x128xf32>
    %58 = vector.shape_cast %57 : vector<1x8x128xf32> to vector<8x128xf32>
    %59 = vector.shape_cast %18 : vector<16x128xf32> to vector<2x8x128xf32>
    %cst_34 = arith.constant dense<0.000000e+00> : vector<8x128xf32>
    %60 = vector.multi_reduction <add>, %59, %cst_34 [0] : vector<2x8x128xf32> to vector<8x128xf32>
    %61 = arith.addf %58, %60 : vector<8x128xf32>
    %c4_35 = arith.constant 4 : index
    %c0_36 = arith.constant 0 : index
    %c0_37 = arith.constant 0 : index
    %62 = vector.load %arg4[%c4_35, %c0_36, %c0_37] : memref<5x8x128xf32, #tpu.memory_space<vmem>>, vector<1x8x128xf32>
    %63 = vector.shape_cast %62 : vector<1x8x128xf32> to vector<8x128xf32>
    %64 = vector.shape_cast %61 : vector<8x128xf32> to vector<1x8x128xf32>
    tpu.vector_store %arg4[%c4_35, %c0_36, %c0_37], %64 {strides = array<i32>} : memref<5x8x128xf32, #tpu.memory_space<vmem>>, vector<1x8x128xf32>,
    %c0_i32_38 = arith.constant 0 : i32
    %65 = arith.cmpi eq, %arg0, %c0_i32_38 : i32
    %66 = arith.extui %65 : i1 to i32
    %c0_i32_39 = arith.constant 0 : i32
    %67 = arith.cmpi ne, %66, %c0_i32_39 : i32
    scf.if %67 {
      %c0_40 = arith.constant 0 : index
      %c0_41 = arith.constant 0 : index
      %c0_42 = arith.constant 0 : index
      %68 = vector.load %arg4[%c0_40, %c0_41, %c0_42] : memref<5x8x128xf32, #tpu.memory_space<vmem>>, vector<1x8x128xf32>
      %69 = vector.shape_cast %68 : vector<1x8x128xf32> to vector<8x128xf32>
      %70 = vector.shape_cast %69 : vector<8x128xf32> to vector<1x8x128xf32>
      %cst_43 = arith.constant dense<0.000000e+00> : vector<1xf32>
      %71 = vector.multi_reduction <add>, %70, %cst_43 [1, 2] : vector<1x8x128xf32> to vector<1xf32>
      %72 = vector.shape_cast %71 : vector<1xf32> to vector<1x1x1xf32>
      %73 = vector.extract %72[0, 0, 0] : f32 from vector<1x1x1xf32>
      %c0_44 = arith.constant 0 : index
      %74 = memref.load %arg3[%c0_44] : memref<5xf32, #tpu.memory_space<smem>>
      memref.store %73, %arg3[%c0_44] : memref<5xf32, #tpu.memory_space<smem>>
      %c1_45 = arith.constant 1 : index
      %c0_46 = arith.constant 0 : index
      %c0_47 = arith.constant 0 : index
      %75 = vector.load %arg4[%c1_45, %c0_46, %c0_47] : memref<5x8x128xf32, #tpu.memory_space<vmem>>, vector<1x8x128xf32>
      %76 = vector.shape_cast %75 : vector<1x8x128xf32> to vector<8x128xf32>
      %77 = vector.shape_cast %76 : vector<8x128xf32> to vector<1x8x128xf32>
      %cst_48 = arith.constant dense<0.000000e+00> : vector<1xf32>
      %78 = vector.multi_reduction <add>, %77, %cst_48 [1, 2] : vector<1x8x128xf32> to vector<1xf32>
      %79 = vector.shape_cast %78 : vector<1xf32> to vector<1x1x1xf32>
      %80 = vector.extract %79[0, 0, 0] : f32 from vector<1x1x1xf32>
      %c1_49 = arith.constant 1 : index
      %81 = memref.load %arg3[%c1_49] : memref<5xf32, #tpu.memory_space<smem>>
      memref.store %80, %arg3[%c1_49] : memref<5xf32, #tpu.memory_space<smem>>
      %c2_50 = arith.constant 2 : index
      %c0_51 = arith.constant 0 : index
      %c0_52 = arith.constant 0 : index
      %82 = vector.load %arg4[%c2_50, %c0_51, %c0_52] : memref<5x8x128xf32, #tpu.memory_space<vmem>>, vector<1x8x128xf32>
      %83 = vector.shape_cast %82 : vector<1x8x128xf32> to vector<8x128xf32>
      %84 = vector.shape_cast %83 : vector<8x128xf32> to vector<1x8x128xf32>
      %cst_53 = arith.constant dense<0.000000e+00> : vector<1xf32>
      %85 = vector.multi_reduction <add>, %84, %cst_53 [1, 2] : vector<1x8x128xf32> to vector<1xf32>
      %86 = vector.shape_cast %85 : vector<1xf32> to vector<1x1x1xf32>
      %87 = vector.extract %86[0, 0, 0] : f32 from vector<1x1x1xf32>
      %c2_54 = arith.constant 2 : index
      %88 = memref.load %arg3[%c2_54] : memref<5xf32, #tpu.memory_space<smem>>
      memref.store %87, %arg3[%c2_54] : memref<5xf32, #tpu.memory_space<smem>>
      %c3_55 = arith.constant 3 : index
      %c0_56 = arith.constant 0 : index
      %c0_57 = arith.constant 0 : index
      %89 = vector.load %arg4[%c3_55, %c0_56, %c0_57] : memref<5x8x128xf32, #tpu.memory_space<vmem>>, vector<1x8x128xf32>
      %90 = vector.shape_cast %89 : vector<1x8x128xf32> to vector<8x128xf32>
      %91 = vector.shape_cast %90 : vector<8x128xf32> to vector<1x8x128xf32>
      %cst_58 = arith.constant dense<0.000000e+00> : vector<1xf32>
      %92 = vector.multi_reduction <add>, %91, %cst_58 [1, 2] : vector<1x8x128xf32> to vector<1xf32>
      %93 = vector.shape_cast %92 : vector<1xf32> to vector<1x1x1xf32>
      %94 = vector.extract %93[0, 0, 0] : f32 from vector<1x1x1xf32>
      %c3_59 = arith.constant 3 : index
      %95 = memref.load %arg3[%c3_59] : memref<5xf32, #tpu.memory_space<smem>>
      memref.store %94, %arg3[%c3_59] : memref<5xf32, #tpu.memory_space<smem>>
      %c4_60 = arith.constant 4 : index
      %c0_61 = arith.constant 0 : index
      %c0_62 = arith.constant 0 : index
      %96 = vector.load %arg4[%c4_60, %c0_61, %c0_62] : memref<5x8x128xf32, #tpu.memory_space<vmem>>, vector<1x8x128xf32>
      %97 = vector.shape_cast %96 : vector<1x8x128xf32> to vector<8x128xf32>
      %98 = vector.shape_cast %97 : vector<8x128xf32> to vector<1x8x128xf32>
      %cst_63 = arith.constant dense<0.000000e+00> : vector<1xf32>
      %99 = vector.multi_reduction <add>, %98, %cst_63 [1, 2] : vector<1x8x128xf32> to vector<1xf32>
      %100 = vector.shape_cast %99 : vector<1xf32> to vector<1x1x1xf32>
      %101 = vector.extract %100[0, 0, 0] : f32 from vector<1x1x1xf32>
      %c4_64 = arith.constant 4 : index
      %102 = memref.load %arg3[%c4_64] : memref<5xf32, #tpu.memory_space<smem>>
      memref.store %101, %arg3[%c4_64] : memref<5xf32, #tpu.memory_space<smem>>
    } else {
    }
    return
  }
  func.func @transform_0(%arg0: i32) -> (i32, i32) {
    %c0_i32 = arith.constant 0 : i32
    %c0_i32_0 = arith.constant 0 : i32
    return %arg0, %c0_i32 : i32, i32
  }
  func.func @transform_1(%arg0: i32) -> (i32, i32) {
    %c0_i32 = arith.constant 0 : i32
    %c0_i32_0 = arith.constant 0 : i32
    return %arg0, %c0_i32 : i32, i32
  }
  func.func @transform_2(%arg0: i32) -> i32 {
    %c0_i32 = arith.constant 0 : i32
    %c0_i32_0 = arith.constant 0 : i32
    return %c0_i32 : i32
  }
}

</mosaic_0001>

<bundles_post_ra>
// kernel: weighted_bce_loss.1
= control target key start
LH: loop header
LB: loop body
LE: loop exit
PB: predicated region body
PF: predicated region fallthrough
CT: control target
= control target key end

     0   :  { %s247_s0 = inlined_call_operand.vmem [shape: f32[16,128], index: 0, kind: input, shape index: {}]   ;;  %s248_s1 = inlined_call_operand.vmem [shape: f32[16,128], index: 1, kind: input, shape index: {}]   ;;  %s249_s2 = inlined_call_operand.vmem [shape: f32[5], index: 2, kind: output, shape index: {}]  }
   0x1   :  { %v23_v0 = vld [vmem:[%s248_s1] sm:$0xff]  ;;  %v24_v1 = vld [vmem:[%s248_s1 + $0x8] sm:$0xff] }
   0x2   :  { %v21_v2 = vld [vmem:[%s247_s0] sm:$0xff]  ;;  %v84_v3 = vadd.f32 %v24_v1, %v23_v0  ;;  %v22_v4 = vld [vmem:[%s247_s0 + $0x8] sm:$0xff] }
   0x3   :  { %v31_v5 = vand.u32 2147483647, %v21_v2 }
   0x4   :  { %7 = vsyncpa [#allocation4], 0  ;;  %v32_v6 = vand.u32 2147483647, %v22_v4  ;;  %vm59_vm0 = vcmp.gt.f32.partialorder %v21_v2, 0.0  ;;  %127 = vadd.xlane.f32.xlu1 %v84_v3  ;;  %vm60_vm1 = vcmp.gt.f32.partialorder %v22_v4, 0.0  ;;  %v27_v25 = vmul.f32 %v23_v0, %v21_v2 }
   0x5   :  { %v33_v7 = vsub.f32 0.0, %v31_v5  ;;  %v215_v8 = vmov 0.0   ;;  %v25_v24 = vmax.f32 %v21_v2, 0.0  ;;  %v26_v28 = vmax.f32 %v22_v4, 0.0  ;;  %s168_s17 = sshll.u32 %s249_s2, 4  ;;  %s169_s17 = int_to_ptr.vmem [resolvable:$true] %s168_s17 }
   0x6   :  { %v177_v9 = vsel %vm59_vm0, 1.0, %v215_v8  ;;  %v34_v10 = vsub.f32 0.0, %v32_v6  ;;  %v178_v11 = vsel %vm60_vm1, 1.0, %v215_v8  ;;  %v28_v29 = vmul.f32 %v24_v1, %v22_v4  ;;  %s201_s23 = scalar_lea.vmem %s169_s17, 16  ;;  %p206_p1 = scmp.lt.s32.totalorder %s169_s17, %s169_s17 }
   0x7   :  { %v89_v12 = vmul.f32 %v177_v9, %v23_v0  ;;  %v35_v13 = vmul.f32 1.442695, %v33_v7  ;;  %v90_v14 = vmul.f32 %v178_v11, %v24_v1  ;;  %v29_v33 = vsub.f32 %v25_v24, %v27_v25  ;;  %p202_p0 = scmp.ne.s32.totalorder %s169_s17, %s201_s23  ;;  %p207_p2 = scmp.lt.s32.totalorder %s201_s23, %s201_s23 }
   0x8   :  { %v37_v15 = vmul.f32 1.442695, %v34_v10  ;;  %vm65_vm3 = vcmp.ge.f32.partialorder %v23_v0, 0.5  ;;  %v30_v36 = vsub.f32 %v26_v28, %v28_v29  ;;  %vm66_vm5 = vcmp.ge.f32.partialorder %v24_v1, 0.5 }
   0x9   :  { %193 = vpow2.f32 %v35_v13  ;;  %v91_v16 = vadd.f32 %v90_v14, %v89_v12  ;;  %v179_v40 = vsel %vm65_vm3, 1.0, %v215_v8  ;;  %v180_v43 = vsel %vm66_vm5, 1.0, %v215_v8  ;;  %p208_p3 = por %p207_p2, %p206_p1 }
   0xa   :  { %195 = vpow2.f32 %v37_v15  ;;  %v96_v49 = vadd.f32 %v178_v11, %v177_v9 }
   0xb   :  { %139 = vadd.xlane.f32.xlu1 %v91_v16  ;;  %p209_p4 = pnand %p208_p3, %p202_p0 }
  0x16   :  { %v194_v17 = vpop.eup %193 }
  0x17   :  { %v196_v18 = vpop.eup %195  ;;  %v39_v19 = vadd.f32 1.0, %v194_v17  ;;  %v42_v21 = vmul.f32 -0.5, %v194_v17  ;;  %v45_v26 = vand.u32 2147483647, %v194_v17 }
  0x18   :  { %v48_v20 = vadd.f32 1.0, %v196_v18  ;;  %v51_v22 = vmul.f32 -0.5, %v196_v18  ;;  %v54_v30 = vand.u32 2147483647, %v196_v18 }
  0x19   :  { %197 = vlog2.f32 %v39_v19  ;;  %v43_v23 = vadd.f32 1.0, %v42_v21  ;;  %vm46_vm2 = vcmp.lt.f32.partialorder %v45_v26, 0.0004427343 }
  0x1a   :  { %199 = vlog2.f32 %v48_v20  ;;  %v52_v27 = vadd.f32 1.0, %v51_v22  ;;  %vm55_vm4 = vcmp.lt.f32.partialorder %v54_v30, 0.0004427343 }
  0x1b   :  { %v44_v31 = vmul.f32 %v194_v17, %v43_v23 }
  0x1c   :  { %v53_v34 = vmul.f32 %v196_v18, %v52_v27 }
  0x26   :  { %v198_v32 = vpop.eup %197 }
  0x27   :  { %v200_v35 = vpop.eup %199  ;;  %v41_v37 = vmul.f32 0.6931472, %v198_v32 }
  0x28   :  { %v50_v38 = vmul.f32 0.6931472, %v200_v35 }
  0x29   :  { %v47_v39 = vsel %vm46_vm2, %v44_v31, %v41_v37 }
  0x2a   :  { %v56_v41 = vsel %vm55_vm4, %v53_v34, %v50_v38  ;;  %v57_v42 = vadd.f32 %v47_v39, %v29_v33 }
  0x2b   :  { %v58_v44 = vadd.f32 %v56_v41, %v30_v36 }
  0x2c   :  { %v72_v45 = vmul.f32 %v179_v40, %v57_v42 }
  0x2d   :  { %v79_v46 = vadd.f32 %v58_v44, %v57_v42  ;;  %v73_v47 = vmul.f32 %v180_v43, %v58_v44 }
  0x2f   :  { %115 = vadd.xlane.f32.xlu0 %v79_v46  ;;  %v74_v48 = vadd.f32 %v73_v47, %v72_v45 }
  0x33   :  { %103 = vadd.xlane.f32.xlu0 %v74_v48 }
  0x37   :  { %151 = vadd.xlane.f32.xlu0 %v96_v49 }
  0x8d   :  { %v128_v50 = vpop.xlane.xlu1 %127 }
  0x8e   :  { %v129_v52 = vrot.slane %v128_v50, 4 }
  0x90   :  { %v130_v55 = vadd.f32 %v129_v52, %v128_v50 }
  0x92   :  { %v131_v60 = vrot.slane %v130_v55, 2 }
  0x94   :  { %v140_v51 = vpop.xlane.xlu1 %139  ;;  %v132_v5 = vadd.f32 %v131_v60, %v130_v55 }
  0x95   :  { %v141_v53 = vrot.slane %v140_v51, 4 }
  0x96   :  { %v133_v12 = vrot.slane %v132_v5, 1 }
  0x97   :  { %v142_v57 = vadd.f32 %v141_v53, %v140_v51 }
  0x98   :  { %v134_v17 = vadd.f32 %v133_v12, %v132_v5 }
  0x99   :  { %v143_v63 = vrot.slane %v142_v57, 2 }
  0x9b   :  { %v144_v6 = vadd.f32 %v143_v63, %v142_v57 }
  0x9d   :  { %v145_v13 = vrot.slane %v144_v6, 1 }
  0x9f   :  { %v146_v19 = vadd.f32 %v145_v13, %v144_v6 }
  0xb8   :  { %v116_v54 = vpop.xlane.xlu0 %115 }
  0xb9   :  { %v117_v56 = vrot.slane %v116_v54, 4 }
  0xbb   :  { %v118_v58 = vadd.f32 %v117_v56, %v116_v54 }
  0xbc   :  { %v104_v59 = vpop.xlane.xlu0 %103 }
  0xbd   :  { %v119_v61 = vrot.slane %v118_v58, 2  ;;  %v105_v62 = vrot.slane %v104_v59, 4 }
  0xbf   :  { %v106_v0 = vadd.f32 %v105_v62, %v104_v59  ;;  %v120_v2 = vadd.f32 %v119_v61, %v118_v58 }
  0xc0   :  { %v152_v1 = vpop.xlane.xlu0 %151 }
  0xc1   :  { %v107_v3 = vrot.slane %v106_v0, 2  ;;  %v153_v4 = vrot.slane %v152_v1, 4  ;;  %v121_v9 = vrot.slane %v120_v2, 1 }
  0xc3   :  { %v154_v7 = vadd.f32 %v153_v4, %v152_v1  ;;  %v108_v8 = vadd.f32 %v107_v3, %v106_v0  ;;  %v122_v16 = vadd.f32 %v121_v9, %v120_v2 }
  0xc5   :  { %v155_v10 = vrot.slane %v154_v7, 2  ;;  %v109_v11 = vrot.slane %v108_v8, 1 }
  0xc7   :  { %v156_v14 = vadd.f32 %v155_v10, %v154_v7  ;;  %v110_v15 = vadd.f32 %v109_v11, %v108_v8 }
  0xc9   :  { %181 = vpush %v110_v15  ;;  %v157_v18 = vrot.slane %v156_v14, 1 }
  0xca   :  { %183 = vpush %v122_v16 }
  0xcb   :  { %185 = vpush %v134_v17  ;;  %v158_v20 = vadd.f32 %v157_v18, %v156_v14 }
  0xcc   :  { %187 = vpush %v146_v19 }
  0xcd   :  { %189 = vpush %v158_v20 }
  0xfa   :  { %s182_s18 = spop %181 }
  0xfb   :  { %113 = sst [smem:[#allocation3]] %s182_s18  ;;  %s184_s19 = spop %183 }
  0xfc   :  { %125 = sst [smem:[#allocation3 + $0x1]] %s184_s19  ;;  %s186_s20 = spop %185 }
  0xfd   :  { %137 = sst [smem:[#allocation3 + $0x2]] %s186_s20  ;;  %s188_s21 = spop %187 }
  0xfe   :  { %149 = sst [smem:[#allocation3 + $0x3]] %s188_s21  ;;  %s190_s22 = spop %189 }
  0xff   :  { %161 = sst [smem:[#allocation3 + $0x4]] %s190_s22 }
 0x100   :  { %212 = shalt.err (!%p209_p4)
}
 0x101   :  { %s216_s24 = smov [#allocation3]  }
 0x102   :  { %171 = dma.smem_to_vmem %s216_s24, 16, %s169_s17, [#allocation4]  }
 0x103   :  { %213 = dma.done.wait [#allocation4], 16  }
 0x104   :  { %214 = vsyncadd [#allocation4], 4294967280 }
 0x105   :  { %175 = sfence }
 0x106   :  { %176 = vsyncpa [#allocation4], 1 }

</bundles_post_ra>
